<compile_context>
chip_gen: v7x
topology: tpu7x:2x2x1
jax: 0.10.0
libtpu: 0.0.40
codegen_flags: <defaults>
</compile_context>

<pallas_src>
import functools

import jax
import jax.numpy as jnp
from jax.experimental import pallas as pl
from jax.experimental.pallas import tpu as pltpu


# --------------------------------------------------------------------------- #
# Fused Pallas kernel                                                          #
# --------------------------------------------------------------------------- #

def _acmodel_fused_kernel(x_ref, w_ref, b_ref, o_ref, *, dims):
    """Whole ACModel forward for one batch tile.

    x_ref : (TB, K0p)  bf16 flattened (h, w, c) image, zero-padded to K0p lanes
    w_ref : (RW, CW)   bf16 packed weight slab (conv1+pool corners | conv2 | conv3 | head1 | head2)
    b_ref : (1,  CW)   f32 packed bias slab
    o_ref : (TB, 128)  f32: lanes [0, A) = log_softmax(actor logits), lane A = critic value
    """
    K0p, PCp, C1p, C2p, Ep, A = (dims["K0p"], dims["PCp"], dims["C1p"],
                                 dims["C2p"], dims["Ep"], dims["A"])
    o1, o2, o3, o4, o5 = dims["o1"], dims["o2"], dims["o3"], dims["o4"], dims["o5"]

    x = x_ref[...]                                                    # (TB, K0p) bf16

    # conv1 (pre-activation) evaluated at the four 2x2-pool corner grids (packed as
    # four lane chunks of width PCp), then ReLU and max over the four chunks
    # (== Conv -> ReLU -> MaxPool2d((2,2))).  bf16 operands, f32 accumulate.
    h1 = jnp.dot(x, w_ref[0:K0p, o1:o1 + C1p],
                 preferred_element_type=jnp.float32) + b_ref[0:1, o1:o1 + C1p]
    h1 = jnp.maximum(h1, 0.0)                                         # f32
    pooled = jnp.maximum(
        jnp.maximum(h1[:, 0 * PCp:1 * PCp], h1[:, 1 * PCp:2 * PCp]),
        jnp.maximum(h1[:, 2 * PCp:3 * PCp], h1[:, 3 * PCp:4 * PCp]))  # (TB, PCp) f32

    # conv2 + ReLU (dense matmul on the flattened pooled map)
    h2 = jnp.maximum(
        jnp.dot(pooled.astype(jnp.bfloat16), w_ref[0:PCp, o2:o2 + C2p],
                preferred_element_type=jnp.float32) + b_ref[0:1, o2:o2 + C2p], 0.0)

    # conv3 + ReLU -> image embedding (packed in PyTorch NCHW flatten order)
    emb = jnp.maximum(
        jnp.dot(h2.astype(jnp.bfloat16), w_ref[0:C2p, o3:o3 + Ep],
                preferred_element_type=jnp.float32) + b_ref[0:1, o3:o3 + Ep], 0.0)

    # heads, stage 1: one (Ep, 128) matmul does actor-fc1 (lanes 0..63) and
    # critic-fc1 (lanes 64..127); tanh once (EUP, f32).
    hid = jnp.tanh(
        jnp.dot(emb.astype(jnp.bfloat16), w_ref[0:Ep, o4:o4 + 128],
                preferred_element_type=jnp.float32) + b_ref[0:1, o4:o4 + 128])

    # heads, stage 2: one (128, 128) matmul packs actor-fc2 (lanes 0..A-1) and
    # critic-fc2 (lane A); output is a single lane-dense slab.
    out = jnp.dot(hid.astype(jnp.bfloat16), w_ref[0:128, o5:o5 + 128],
                  preferred_element_type=jnp.float32) + b_ref[0:1, o5:o5 + 128]

    # masked log_softmax over the A logit lanes; lane A (the value) passes through.
    # Mask BEFORE the exp: the value lane underflows to exactly 0, never inf/NaN.
    lane = jax.lax.broadcasted_iota(jnp.int32, out.shape, 1)
    is_logit = lane < A
    neg = jnp.float32(-1e30)
    masked = jnp.where(is_logit, out, neg)
    mx = jnp.max(masked, axis=1, keepdims=True)
    p = jnp.exp(masked - mx)
    lse = jnp.log(jnp.sum(p, axis=1, keepdims=True))
    o_ref[...] = jnp.where(is_logit, out - mx - lse, out)


# --------------------------------------------------------------------------- #
# Forward wrapper (single pallas_call, batch-parallel grid)                    #
# --------------------------------------------------------------------------- #

def _r8(v):
    return ((v + 7) // 8) * 8


def acmodel_forward(image, memory, w_slab, b_slab, *, dims):
    """image: (B, n, m, 3) float32 (== obs.image); memory passed through (use_memory=False)."""
    B = image.shape[0]
    K0, K0p, A = dims["K0"], dims["K0p"], dims["A"]

    # Tile selection: up to 512 rows per step (fills the 256-row MXU on v6e/v7x and
    # amortizes per-grid-step overhead), but aim for >= 2 grid steps whenever the
    # batch allows it so both v7x TensorCores get work.
    Bp8 = _r8(max(B, 1))
    TB = min(512, max(8, _r8(Bp8 // 2)))
    Bp = ((Bp8 + TB - 1) // TB) * TB

    # Single fused reshape -> bf16 cast -> pad.  Padded rows/lanes flow through zero
    # weight rows, so padding is exact and discarded below.
    x = image.reshape(B, K0).astype(jnp.bfloat16)
    x = jnp.pad(x, ((0, Bp - B), (0, K0p - K0)))

    RW, CW = w_slab.shape
    flops_per_row = 2 * (dims["K0p"] * dims["C1p"] + dims["PCp"] * dims["C2p"]
                         + dims["C2p"] * dims["Ep"] + dims["Ep"] * 128 + 128 * 128)
    cost = pl.CostEstimate(
        flops=int(Bp * flops_per_row),
        transcendentals=int(Bp * 256),                       # tanh + exp lanes per row
        bytes_accessed=int(Bp * K0p * 2 + RW * CW * 2 + CW * 4 + Bp * 128 * 4),
    )

    out = pl.pallas_call(
        functools.partial(_acmodel_fused_kernel, dims=dims),
        grid=(Bp // TB,),
        out_shape=jax.ShapeDtypeStruct((Bp, 128), jnp.float32),
        in_specs=[
            pl.BlockSpec((TB, K0p), lambda i: (i, 0)),
            pl.BlockSpec(w_slab.shape, lambda i: (0, 0)),   # constant index_map -> VMEM-resident
            pl.BlockSpec(b_slab.shape, lambda i: (0, 0)),   # constant index_map -> VMEM-resident
        ],
        out_specs=pl.BlockSpec((TB, 128), lambda i: (i, 0)),
        compiler_params=pltpu.CompilerParams(dimension_semantics=("parallel",)),
        cost_estimate=cost,
    )(x, w_slab, b_slab)

    log_probs = out[:B, :A]   # == F.log_softmax(actor(emb), dim=1)  (the dist logits)
    value = out[:B, A]        # == critic(emb).squeeze(1)
    return log_probs, value, memory


# --------------------------------------------------------------------------- #
# Parameter init + pack-time folding of conv/pool/flatten into dense slabs     #
# --------------------------------------------------------------------------- #

def _conv2x2(x, w):
    """NHWC 'valid' 2x2 conv, no bias.  x: (B,H,W,C), w: (2,2,Cin,Cout)."""
    _, H, W, _ = x.shape
    oh, ow = H - 1, W - 1
    y = jnp.zeros((x.shape[0], oh, ow, w.shape[-1]), jnp.float32)
    for dh in range(2):
        for dw in range(2):
            y = y + jnp.einsum("bhwc,cf->bhwf", x[:, dh:dh + oh, dw:dw + ow, :],
                               w[dh, dw], precision=jax.lax.Precision.HIGHEST)
    return y


def _affine_to_matrix(fn, in_dim):
    """fn: affine map R^in -> R^out.  Returns (M, v) with fn(x) == x @ M + v."""
    v = fn(jnp.zeros((in_dim,), jnp.float32))
    M = jax.vmap(fn)(jnp.eye(in_dim, dtype=jnp.float32)) - v[None, :]
    return M, v


def _r128(v):
    return ((v + 127) // 128) * 128


def init_model_params(key, n, m, n_actions):
    """Raw ACModel params (PyTorch-equivalent layout; init_params for the Linears)."""
    ks = jax.random.split(key, 10)

    def conv_init(kw, kb, cin, cout):                   # PyTorch Conv2d default init
        bound = 1.0 / (2.0 * 2.0 * cin) ** 0.5
        w = jax.random.uniform(kw, (2, 2, cin, cout), jnp.float32, -bound, bound)
        b = jax.random.uniform(kb, (cout,), jnp.float32, -bound, bound)
        return w, b

    def linear_init(k, din, dout):                      # init_params: N(0,1) row-normalized, bias 0
        w = jax.random.normal(k, (dout, din), jnp.float32)
        w = w / jnp.sqrt(jnp.sum(w * w, axis=1, keepdims=True))
        return w.T, jnp.zeros((dout,), jnp.float32)     # stored as (din, dout)

    E = ((n - 1) // 2 - 2) * ((m - 1) // 2 - 2) * 64    # image_embedding_size
    k1, b1 = conv_init(ks[0], ks[1], 3, 16)
    k2, b2 = conv_init(ks[2], ks[3], 16, 32)
    k3, b3 = conv_init(ks[4], ks[5], 32, 64)
    wa1, ba1 = linear_init(ks[6], E, 64)
    wa2, ba2 = linear_init(ks[7], 64, n_actions)
    wc1, bc1 = linear_init(ks[8], E, 64)
    wc2, bc2 = linear_init(ks[9], 64, 1)
    return dict(k1=k1, b1=b1, k2=k2, b2=b2, k3=k3, b3=b3,
                wa1=wa1, ba1=ba1, wa2=wa2, ba2=ba2,
                wc1=wc1, bc1=bc1, wc2=wc2, bc2=bc2), E


def pack_params(raw, n, m, n_actions):
    """Fold conv/pool/flatten structure + all 13 tensors into 2 lane-aligned slabs.

    Weight slab is stored bf16 (MXU-native on v5e/v6e/v7x, halves DMA/VMEM); the tiny
    bias slab stays f32 so the folded multi-stage conv biases (and all element-wise
    adds) remain full precision.
    """
    assert n_actions <= 127, "value is packed at lane n_actions of the 128-lane output"
    ph, pw = (n - 1) // 2, (m - 1) // 2                 # pooled spatial
    h2h, h2w = ph - 1, pw - 1                           # conv2 output spatial
    E = (ph - 2) * (pw - 2) * 64                        # image_embedding_size
    K0 = n * m * 3
    PC = ph * pw * 16
    C2 = h2h * h2w * 32
    A = n_actions
    k1, b1, k2, b2, k3, b3 = (raw[x] for x in ("k1", "b1", "k2", "b2", "k3", "b3"))

    def stage1(xflat):      # conv1(+bias) sampled at the 4 max-pool corner grids, no ReLU
        x = xflat.reshape(1, n, m, 3)
        h = _conv2x2(x, k1) + b1
        cs = [h[0, di:di + 2 * ph:2, dj:dj + 2 * pw:2, :].reshape(-1)
              for di in (0, 1) for dj in (0, 1)]
        return jnp.concatenate(cs)

    def stage2(pflat):      # conv2(+bias), no ReLU
        return (_conv2x2(pflat.reshape(1, ph, pw, 16), k2) + b2).reshape(-1)

    def stage3(hflat):      # conv3(+bias), no ReLU, flattened in PyTorch NCHW order
        y = _conv2x2(hflat.reshape(1, h2h, h2w, 32), k3) + b3
        return jnp.transpose(y, (0, 3, 1, 2)).reshape(-1)

    M1, v1 = _affine_to_matrix(stage1, K0)              # (K0, 4*PC)
    M2, v2 = _affine_to_matrix(stage2, PC)              # (PC, C2)
    M3, v3 = _affine_to_matrix(stage3, C2)              # (C2, E)

    # lane-dense head packing: actor-fc1 | critic-fc1 side by side; fc2 + value column.
    Wh = jnp.concatenate([raw["wa1"], raw["wc1"]], axis=1)          # (E, 128)
    bh = jnp.concatenate([raw["ba1"], raw["bc1"]])                  # (128,)
    W2 = jnp.zeros((128, 128), jnp.float32)
    W2 = W2.at[:64, :A].set(raw["wa2"]).at[64:128, A].set(raw["wc2"][:, 0])
    b2v = jnp.zeros((128,), jnp.float32).at[:A].set(raw["ba2"]).at[A].set(raw["bc2"][0])

    K0p, PCp, C2p, Ep = _r128(K0), _r128(PC), _r128(C2), _r128(E)
    C1p = 4 * PCp
    o1, o2 = 0, C1p
    o3, o4 = o2 + C2p, o2 + C2p + Ep
    o5 = o4 + 128
    CW = o5 + 128
    RW = max(K0p, PCp, C2p, Ep, 128)

    W = jnp.zeros((RW, CW), jnp.float32)
    bvec = jnp.zeros((1, CW), jnp.float32)
    for k in range(4):      # four pool-corner chunks, each padded to PCp lanes
        W = W.at[:K0, o1 + k * PCp:o1 + k * PCp + PC].set(M1[:, k * PC:(k + 1) * PC])
        bvec = bvec.at[0, o1 + k * PCp:o1 + k * PCp + PC].set(v1[k * PC:(k + 1) * PC])
    W = W.at[:PC, o2:o2 + C2].set(M2)
    W = W.at[:C2, o3:o3 + E].set(M3)
    W = W.at[:E, o4:o4 + 128].set(Wh)
    W = W.at[:128, o5:o5 + 128].set(W2)
    bvec = bvec.at[0, o2:o2 + C2].set(v2)
    bvec = bvec.at[0, o3:o3 + E].set(v3)
    bvec = bvec.at[0, o4:o4 + 128].set(bh)
    bvec = bvec.at[0, o5:o5 + 128].set(b2v)

    dims = dict(K0=K0, K0p=K0p, PCp=PCp, C1p=C1p, C2p=C2p, Ep=Ep, A=A,
                o1=o1, o2=o2, o3=o3, o4=o4, o5=o5, E=E)
    return W.astype(jnp.bfloat16), bvec, dims


# --------------------------------------------------------------------------- #
# Pure-JAX reference (for correctness check only)                              #
# --------------------------------------------------------------------------- #

def acmodel_reference(image, raw, n, m):
    B = image.shape[0]
    ph, pw = (n - 1) // 2, (m - 1) // 2
    hp = jax.lax.Precision.HIGHEST
    h = jax.nn.relu(_conv2x2(image, raw["k1"]) + raw["b1"])
    corners = [h[:, di:di + 2 * ph:2, dj:dj + 2 * pw:2, :]
               for di in (0, 1) for dj in (0, 1)]
    p = jnp.maximum(jnp.maximum(corners[0], corners[1]),
                    jnp.maximum(corners[2], corners[3]))
    h = jax.nn.relu(_conv2x2(p, raw["k2"]) + raw["b2"])
    h = jax.nn.relu(_conv2x2(h, raw["k3"]) + raw["b3"])
    emb = jnp.transpose(h, (0, 3, 1, 2)).reshape(B, -1)          # NCHW flatten
    ha = jnp.tanh(jnp.dot(emb, raw["wa1"], precision=hp) + raw["ba1"])
    logits = jnp.dot(ha, raw["wa2"], precision=hp) + raw["ba2"]
    logp = jax.nn.log_softmax(logits, axis=1)
    hc = jnp.tanh(jnp.dot(emb, raw["wc1"], precision=hp) + raw["bc1"])
    value = (jnp.dot(hc, raw["wc2"], precision=hp) + raw["bc2"])[:, 0]
    return logp, value


# --------------------------------------------------------------------------- #
# main                                                                         #
# --------------------------------------------------------------------------- #

if __name__ == "__main__":
    B, n, m, n_actions = 2, 7, 7, 7          # MiniGrid-style 7x7x3 observation
    key = jax.random.PRNGKey(0)
    k_img, k_par = jax.random.split(key)

    raw, E = init_model_params(k_par, n, m, n_actions)
    w_slab, b_slab, dims = pack_params(raw, n, m, n_actions)

    image = jax.random.uniform(k_img, (B, n, m, 3), jnp.float32, 0.0, 10.0)
    memory = jnp.zeros((B, 2 * E), jnp.float32)   # memory_size = 2 * semi_memory_size

    forward = jax.jit(functools.partial(acmodel_forward, dims=dims))
    log_probs, value, memory_out = forward(image, memory, w_slab, b_slab)
    jax.block_until_ready((log_probs, value, memory_out))

    assert log_probs.shape == (B, n_actions)
    assert value.shape == (B,)
    assert memory_out.shape == (B, 2 * E)
    # dist is Categorical(logits=log_softmax(x)): rows of exp(log_probs) sum to 1
    assert bool(jnp.all(jnp.abs(jnp.sum(jnp.exp(log_probs), axis=1) - 1.0) < 1e-4))

    # cross-check the fused bf16-operand kernel against a pure-f32 JAX reference
    ref_logp, ref_value = acmodel_reference(image, raw, n, m)
    assert bool(jnp.max(jnp.abs(log_probs - ref_logp)) < 5e-2)
    assert bool(jnp.max(jnp.abs(value - ref_value)) < 5e-2)

    # TODO(synk): Categorical sampling and the optional LSTMCell/GRU branches
    # (use_memory / use_text) have no Pallas implementation here; the kernel returns
    # the dist logits (log-probs), the value, and passes memory through unchanged.
    print("KERNEL_OK")
</pallas_src>

<mosaic_0001>
module attributes {stable_mosaic.version = 11 : i64} {
  func.func @_acmodel_fused_kernel(%arg0: i32, %arg1: memref<8x256xbf16, #tpu.memory_space<vmem>>, %arg2: memref<256x1536xbf16, #tpu.memory_space<vmem>>, %arg3: memref<1x1536xf32, #tpu.memory_space<vmem>>, %arg4: memref<8x128xf32, #tpu.memory_space<vmem>>) attributes {dimension_semantics = [#tpu.dimension_semantics<parallel>], iteration_bounds = array<i64: 1>, scalar_prefetch = 0 : i64, scratch_operands = 0 : i64, tpu.core_type = #tpu.core_type<tc>, window_params = [{transform_indices = @transform_0, window_bounds = array<i64: 8, 256>}, {pipeline_mode = #tpu.pipeline_mode<synchronous>, transform_indices = @transform_1, window_bounds = array<i64: 256, 1536>}, {pipeline_mode = #tpu.pipeline_mode<synchronous>, transform_indices = @transform_2, window_bounds = array<i64: 1, 1536>}, {transform_indices = @transform_3, window_bounds = array<i64: 8, 128>}]} {
    %c0 = arith.constant 0 : index
    %c0_0 = arith.constant 0 : index
    %0 = vector.load %arg1[%c0, %c0_0] : memref<8x256xbf16, #tpu.memory_space<vmem>>, vector<8x256xbf16>
    %c0_1 = arith.constant 0 : index
    %c0_2 = arith.constant 0 : index
    %1 = vector.load %arg2[%c0_1, %c0_2] : memref<256x1536xbf16, #tpu.memory_space<vmem>>, vector<256x1024xbf16>
    %cst = arith.constant dense<0.000000e+00> : vector<8x1024xf32>
    %2 = tpu.matmul %0, %1, %cst {dimension_numbers = #tpu.dot_dimension_numbers<[1], [0], [0], [1], [0, 0, 1, 1], [], []>} : vector<8x256xbf16>, vector<256x1024xbf16>, vector<8x1024xf32> -> vector<8x1024xf32>
    %c0_3 = arith.constant 0 : index
    %c0_4 = arith.constant 0 : index
    %3 = vector.load %arg3[%c0_3, %c0_4] : memref<1x1536xf32, #tpu.memory_space<vmem>>, vector<1x1024xf32>
    %4 = vector.broadcast %3 : vector<1x1024xf32> to vector<8x1024xf32>
    %5 = arith.addf %2, %4 : vector<8x1024xf32>
    %cst_5 = arith.constant 0.000000e+00 : f32
    %6 = vector.broadcast %cst_5 : f32 to vector<8x1024xf32>
    %7 = arith.maximumf %5, %6 : vector<8x1024xf32>
    %8 = vector.extract_strided_slice %7 {offsets = [0, 0], sizes = [8, 256], strides = [1, 1]} : vector<8x1024xf32> to vector<8x256xf32>
    %9 = vector.extract_strided_slice %7 {offsets = [0, 256], sizes = [8, 256], strides = [1, 1]} : vector<8x1024xf32> to vector<8x256xf32>
    %10 = arith.maximumf %8, %9 : vector<8x256xf32>
    %11 = vector.extract_strided_slice %7 {offsets = [0, 512], sizes = [8, 256], strides = [1, 1]} : vector<8x1024xf32> to vector<8x256xf32>
    %12 = vector.extract_strided_slice %7 {offsets = [0, 768], sizes = [8, 256], strides = [1, 1]} : vector<8x1024xf32> to vector<8x256xf32>
    %13 = arith.maximumf %11, %12 : vector<8x256xf32>
    %14 = arith.maximumf %10, %13 : vector<8x256xf32>
    %15 = arith.truncf %14 : vector<8x256xf32> to vector<8x256xbf16>
    %c0_6 = arith.constant 0 : index
    %c1024 = arith.constant 1024 : index
    %16 = vector.load %arg2[%c0_6, %c1024] : memref<256x1536xbf16, #tpu.memory_space<vmem>>, vector<256x128xbf16>
    %cst_7 = arith.constant dense<0.000000e+00> : vector<8x128xf32>
    %17 = tpu.matmul %15, %16, %cst_7 {dimension_numbers = #tpu.dot_dimension_numbers<[1], [0], [0], [1], [0, 0, 1, 1], [], []>} : vector<8x256xbf16>, vector<256x128xbf16>, vector<8x128xf32> -> vector<8x128xf32>
    %c0_8 = arith.constant 0 : index
    %c1024_9 = arith.constant 1024 : index
    %18 = vector.load %arg3[%c0_8, %c1024_9] : memref<1x1536xf32, #tpu.memory_space<vmem>>, vector<1x128xf32>
    %19 = vector.broadcast %18 : vector<1x128xf32> to vector<8x128xf32>
    %20 = arith.addf %17, %19 : vector<8x128xf32>
    %cst_10 = arith.constant 0.000000e+00 : f32
    %21 = vector.broadcast %cst_10 : f32 to vector<8x128xf32>
    %22 = arith.maximumf %20, %21 : vector<8x128xf32>
    %23 = arith.truncf %22 : vector<8x128xf32> to vector<8x128xbf16>
    %c0_11 = arith.constant 0 : index
    %c1152 = arith.constant 1152 : index
    %24 = vector.load %arg2[%c0_11, %c1152] : memref<256x1536xbf16, #tpu.memory_space<vmem>>, vector<128x128xbf16>
    %cst_12 = arith.constant dense<0.000000e+00> : vector<8x128xf32>
    %25 = tpu.matmul %23, %24, %cst_12 {dimension_numbers = #tpu.dot_dimension_numbers<[1], [0], [0], [1], [0, 0, 1, 1], [], []>} : vector<8x128xbf16>, vector<128x128xbf16>, vector<8x128xf32> -> vector<8x128xf32>
    %c0_13 = arith.constant 0 : index
    %c1152_14 = arith.constant 1152 : index
    %26 = vector.load %arg3[%c0_13, %c1152_14] : memref<1x1536xf32, #tpu.memory_space<vmem>>, vector<1x128xf32>
    %27 = vector.broadcast %26 : vector<1x128xf32> to vector<8x128xf32>
    %28 = arith.addf %25, %27 : vector<8x128xf32>
    %cst_15 = arith.constant 0.000000e+00 : f32
    %29 = vector.broadcast %cst_15 : f32 to vector<8x128xf32>
    %30 = arith.maximumf %28, %29 : vector<8x128xf32>
    %31 = arith.truncf %30 : vector<8x128xf32> to vector<8x128xbf16>
    %c0_16 = arith.constant 0 : index
    %c1280 = arith.constant 1280 : index
    %32 = vector.load %arg2[%c0_16, %c1280] : memref<256x1536xbf16, #tpu.memory_space<vmem>>, vector<128x128xbf16>
    %cst_17 = arith.constant dense<0.000000e+00> : vector<8x128xf32>
    %33 = tpu.matmul %31, %32, %cst_17 {dimension_numbers = #tpu.dot_dimension_numbers<[1], [0], [0], [1], [0, 0, 1, 1], [], []>} : vector<8x128xbf16>, vector<128x128xbf16>, vector<8x128xf32> -> vector<8x128xf32>
    %c0_18 = arith.constant 0 : index
    %c1280_19 = arith.constant 1280 : index
    %34 = vector.load %arg3[%c0_18, %c1280_19] : memref<1x1536xf32, #tpu.memory_space<vmem>>, vector<1x128xf32>
    %35 = vector.broadcast %34 : vector<1x128xf32> to vector<8x128xf32>
    %36 = arith.addf %33, %35 : vector<8x128xf32>
    %37 = math.tanh %36 : vector<8x128xf32>
    %38 = arith.truncf %37 : vector<8x128xf32> to vector<8x128xbf16>
    %c0_20 = arith.constant 0 : index
    %c1408 = arith.constant 1408 : index
    %39 = vector.load %arg2[%c0_20, %c1408] : memref<256x1536xbf16, #tpu.memory_space<vmem>>, vector<128x128xbf16>
    %cst_21 = arith.constant dense<0.000000e+00> : vector<8x128xf32>
    %40 = tpu.matmul %38, %39, %cst_21 {dimension_numbers = #tpu.dot_dimension_numbers<[1], [0], [0], [1], [0, 0, 1, 1], [], []>} : vector<8x128xbf16>, vector<128x128xbf16>, vector<8x128xf32> -> vector<8x128xf32>
    %c0_22 = arith.constant 0 : index
    %c1408_23 = arith.constant 1408 : index
    %41 = vector.load %arg3[%c0_22, %c1408_23] : memref<1x1536xf32, #tpu.memory_space<vmem>>, vector<1x128xf32>
    %42 = vector.broadcast %41 : vector<1x128xf32> to vector<8x128xf32>
    %43 = arith.addf %40, %42 : vector<8x128xf32>
    %44 = tpu.iota {dimensions = array<i32: 1>} : vector<8x128xi32>
    %c7_i32 = arith.constant 7 : i32
    %45 = vector.broadcast %c7_i32 : i32 to vector<8x128xi32>
    %46 = arith.cmpi slt, %44, %45 : vector<8x128xi32>
    %cst_24 = arith.constant -1.000000e+30 : f32
    %47 = vector.broadcast %cst_24 : f32 to vector<8x128xf32>
    %48 = arith.select %46, %43, %47 : vector<8x128xi1>, vector<8x128xf32>
    %cst_25 = arith.constant dense<0xFF800000> : vector<8xf32>
    %49 = vector.multi_reduction <maximumf>, %48, %cst_25 [1] : vector<8x128xf32> to vector<8xf32>
    %50 = vector.shape_cast %49 : vector<8xf32> to vector<8x1xf32>
    %51 = vector.broadcast %50 : vector<8x1xf32> to vector<8x128xf32>
    %52 = arith.subf %48, %51 : vector<8x128xf32>
    %53 = math.exp %52 : vector<8x128xf32>
    %cst_26 = arith.constant dense<0.000000e+00> : vector<8xf32>
    %54 = vector.multi_reduction <add>, %53, %cst_26 [1] : vector<8x128xf32> to vector<8xf32>
    %55 = vector.shape_cast %54 : vector<8xf32> to vector<8x1xf32>
    %56 = math.log %55 : vector<8x1xf32>
    %57 = vector.broadcast %50 : vector<8x1xf32> to vector<8x128xf32>
    %58 = arith.subf %43, %57 : vector<8x128xf32>
    %59 = vector.broadcast %56 : vector<8x1xf32> to vector<8x128xf32>
    %60 = arith.subf %58, %59 : vector<8x128xf32>
    %61 = arith.select %46, %60, %43 : vector<8x128xi1>, vector<8x128xf32>
    %c0_27 = arith.constant 0 : index
    %c0_28 = arith.constant 0 : index
    %62 = vector.load %arg4[%c0_27, %c0_28] : memref<8x128xf32, #tpu.memory_space<vmem>>, vector<8x128xf32>
    tpu.vector_store %arg4[%c0_27, %c0_28], %61 {strides = array<i32>} : memref<8x128xf32, #tpu.memory_space<vmem>>, vector<8x128xf32>,
    return
  }
  func.func @transform_0(%arg0: i32) -> (i32, i32) {
    %c0_i32 = arith.constant 0 : i32
    %c0_i32_0 = arith.constant 0 : i32
    return %arg0, %c0_i32 : i32, i32
  }
  func.func @transform_1(%arg0: i32) -> (i32, i32) {
    %c0_i32 = arith.constant 0 : i32
    %c0_i32_0 = arith.constant 0 : i32
    %c0_i32_1 = arith.constant 0 : i32
    return %c0_i32, %c0_i32_0 : i32, i32
  }
  func.func @transform_2(%arg0: i32) -> (i32, i32) {
    %c0_i32 = arith.constant 0 : i32
    %c0_i32_0 = arith.constant 0 : i32
    %c0_i32_1 = arith.constant 0 : i32
    return %c0_i32, %c0_i32_0 : i32, i32
  }
  func.func @transform_3(%arg0: i32) -> (i32, i32) {
    %c0_i32 = arith.constant 0 : i32
    %c0_i32_0 = arith.constant 0 : i32
    return %arg0, %c0_i32 : i32, i32
  }
}

</mosaic_0001>

<bundles_post_ra>
// kernel: acmodel_forward.1
= control target key start
LH: loop header
LB: loop body
LE: loop exit
PB: predicated region body
PF: predicated region fallthrough
CT: control target
= control target key end

     0   :  { %8 = vsyncpa [#allocation3], 0  ;;  %s2115_s12 = smov [#allocation2]   ;;  %s2213_s0 = inlined_call_operand.vmem [shape: bf16[8,256], index: 0, kind: input, shape index: {}]   ;;  %s2214_s1 = inlined_call_operand.hbm [shape: bf16[256,1536], index: 1, kind: input, shape index: {}]   ;;  %s2215_s2 = inlined_call_operand.vmem [shape: f32[1,1536], index: 2, kind: input, shape index: {}]   ;;  %s2216_s3 = inlined_call_operand.vmem [shape: f32[8,128], index: 3, kind: output, shape index: {}]  }
   0x1   :  { %s16_s13 = sshll.u32 %s2115_s12, 4  ;;  %s2091_s16 = scalar_lea.hbm %s2214_s1, 24576  ;;  %s17_s13 = int_to_ptr.vmem [resolvable:$true] %s16_s13 }
   0x2   :  { %p2092_p0 = scmp.ne.s32.totalorder %s2214_s1, %s2091_s16  ;;  %p2095_p1 = scmp.lt.u32.totalorder %s2091_s16, %s2214_s1 }
   0x4   :  { %p2097_p2 = pnand %p2095_p1, %p2092_p0 }
   0x6   :  { %2100 = shalt.err (!%p2097_p2)
}
   0x7   :  { %s2101_s21 = scalar_lea.vmem %s17_s13, 24576  ;;  %p2106_p4 = scmp.lt.s32.totalorder %s17_s13, %s17_s13 }
   0x8   :  { %p2102_p3 = scmp.ne.s32.totalorder %s17_s13, %s2101_s21  ;;  %p2107_p5 = scmp.lt.s32.totalorder %s2101_s21, %s2101_s21 }
   0xa   :  { %p2108_p6 = por %p2107_p5, %p2106_p4 }
   0xc   :  { %p2109_p7 = pnand %p2108_p6, %p2102_p3 }
   0xe   :  { %2112 = shalt.err (!%p2109_p7)
}
   0xf   :  { %s2116_s22 = smov 768   ;;  %s2117_s23 = smov 48  }
  0x10   :  { %22 = dma.hbm_to_vmem [thread:$0]  %s2214_s1, 24576, %s17_s13, [#allocation3], %s2116_s22, %s2116_s22, %s2117_s23  }
  0x11   :  { %2113 = dma.done.wait [#allocation3], 24576  }
  0x12   :  { %2114 = vsyncadd [#allocation3], 4294942720  ;;  %v1851_v0 = vld [vmem:[#allocation2 + $0x4] ss:$48 sps:$4 sm:$0xff]   ;;  %v1853_v1 = vld [vmem:[#allocation2 + $0xc] ss:$48 sps:$4 sm:$0xff]  }
  0x13   :  { %847 = vmatprep.subr.bf16.mxu0 %v1851_v0  ;;  %v1855_v2 = vld [vmem:[#allocation2] ss:$48 sps:$4 sm:$0xff]   ;;  %v1856_v3 = vld [vmem:[#allocation2 + $0x8] ss:$48 sps:$4 sm:$0xff]   ;;  %888 = vmatprep.subr.bf16.mxu1 %v1853_v1  ;;  %v1857_v4 = vld [vmem:[#allocation2 + $0x64] ss:$48 sps:$4 sm:$0xff]  }
  0x14   :  { %848 = vmatpush1.bf16.msra.mxu0 %v1855_v2  ;;  %889 = vmatpush1.bf16.msra.mxu1 %v1856_v3  ;;  %v1859_v5 = vld [vmem:[#allocation2 + $0x6c] ss:$48 sps:$4 sm:$0xff]   ;;  %v1861_v6 = vld [vmem:[#allocation2 + $0x60] ss:$48 sps:$4 sm:$0xff]   ;;  %v1862_v7 = vld [vmem:[#allocation2 + $0x68] ss:$48 sps:$4 sm:$0xff]  }
  0x15   :  { %849 = vmatprep.subr.bf16.mxu0 %v1857_v4  ;;  %890 = vmatprep.subr.bf16.mxu1 %v1859_v5  ;;  %v1863_v8 = vld [vmem:[#allocation2 + $0xc4] ss:$48 sps:$4 sm:$0xff]   ;;  %v1865_v9 = vld [vmem:[#allocation2 + $0xcc] ss:$48 sps:$4 sm:$0xff]   ;;  %v1867_v10 = vld [vmem:[#allocation2 + $0xc0] ss:$48 sps:$4 sm:$0xff]  }
  0x16   :  { %v1868_v11 = vld [vmem:[#allocation2 + $0xc8] ss:$48 sps:$4 sm:$0xff]   ;;  %v1869_v12 = vld [vmem:[#allocation2 + $0x124] ss:$48 sps:$4 sm:$0xff]   ;;  %v1871_v13 = vld [vmem:[#allocation2 + $0x12c] ss:$48 sps:$4 sm:$0xff]  }
  0x17   :  { %v1873_v14 = vld [vmem:[#allocation2 + $0x120] ss:$48 sps:$4 sm:$0xff]   ;;  %v1874_v15 = vld [vmem:[#allocation2 + $0x128] ss:$48 sps:$4 sm:$0xff]   ;;  %v1875_v16 = vld [vmem:[#allocation2 + $0x184] ss:$48 sps:$4 sm:$0xff]  }
  0x18   :  { %850 = vmatpush1.bf16.msra.mxu0 %v1861_v6  ;;  %891 = vmatpush1.bf16.msra.mxu1 %v1862_v7  ;;  %v1877_v17 = vld [vmem:[#allocation2 + $0x18c] ss:$48 sps:$4 sm:$0xff]   ;;  %v1879_v18 = vld [vmem:[#allocation2 + $0x180] ss:$48 sps:$4 sm:$0xff]   ;;  %v1880_v19 = vld [vmem:[#allocation2 + $0x188] ss:$48 sps:$4 sm:$0xff]  }
  0x19   :  { %851 = vmatprep.subr.bf16.mxu0 %v1863_v8  ;;  %892 = vmatprep.subr.bf16.mxu1 %v1865_v9  ;;  %v1881_v20 = vld [vmem:[#allocation2 + $0x1e4] ss:$48 sps:$4 sm:$0xff]   ;;  %v1883_v21 = vld [vmem:[#allocation2 + $0x1ec] ss:$48 sps:$4 sm:$0xff]   ;;  %v1885_v22 = vld [vmem:[#allocation2 + $0x1e0] ss:$48 sps:$4 sm:$0xff]  }
  0x1a   :  { %v1886_v23 = vld [vmem:[#allocation2 + $0x1e8] ss:$48 sps:$4 sm:$0xff]   ;;  %v1887_v24 = vld [vmem:[#allocation2 + $0x244] ss:$48 sps:$4 sm:$0xff]   ;;  %v1889_v25 = vld [vmem:[#allocation2 + $0x24c] ss:$48 sps:$4 sm:$0xff]  }
  0x1b   :  { %v1891_v26 = vld [vmem:[#allocation2 + $0x240] ss:$48 sps:$4 sm:$0xff]   ;;  %v1892_v27 = vld [vmem:[#allocation2 + $0x248] ss:$48 sps:$4 sm:$0xff]   ;;  %v1893_v28 = vld [vmem:[#allocation2 + $0x2a4] ss:$48 sps:$4 sm:$0xff]  }
  0x1c   :  { %852 = vmatpush1.bf16.msra.mxu0 %v1867_v10  ;;  %893 = vmatpush1.bf16.msra.mxu1 %v1868_v11  ;;  %v1895_v29 = vld [vmem:[#allocation2 + $0x2ac] ss:$48 sps:$4 sm:$0xff]   ;;  %v1897_v30 = vld [vmem:[#allocation2 + $0x2a0] ss:$48 sps:$4 sm:$0xff]   ;;  %v1898_v31 = vld [vmem:[#allocation2 + $0x2a8] ss:$48 sps:$4 sm:$0xff]  }
  0x1d   :  { %853 = vmatprep.subr.bf16.mxu0 %v1869_v12  ;;  %894 = vmatprep.subr.bf16.mxu1 %v1871_v13  ;;  %v1899_v32 = vld [vmem:[#allocation2 + $0x304] ss:$48 sps:$4 sm:$0xff]   ;;  %v1901_v33 = vld [vmem:[#allocation2 + $0x30c] ss:$48 sps:$4 sm:$0xff]   ;;  %v1903_v34 = vld [vmem:[#allocation2 + $0x300] ss:$48 sps:$4 sm:$0xff]  }
  0x1e   :  { %v1904_v35 = vld [vmem:[#allocation2 + $0x308] ss:$48 sps:$4 sm:$0xff]   ;;  %v1905_v36 = vld [vmem:[#allocation2 + $0x364] ss:$48 sps:$4 sm:$0xff]   ;;  %v1907_v37 = vld [vmem:[#allocation2 + $0x36c] ss:$48 sps:$4 sm:$0xff]  }
  0x1f   :  { %v1909_v38 = vld [vmem:[#allocation2 + $0x360] ss:$48 sps:$4 sm:$0xff]   ;;  %v1910_v39 = vld [vmem:[#allocation2 + $0x368] ss:$48 sps:$4 sm:$0xff]   ;;  %v1911_v40 = vld [vmem:[#allocation2 + $0x3c4] ss:$48 sps:$4 sm:$0xff]  }
  0x20   :  { %854 = vmatpush1.bf16.msra.mxu0 %v1873_v14  ;;  %895 = vmatpush1.bf16.msra.mxu1 %v1874_v15  ;;  %v1913_v41 = vld [vmem:[#allocation2 + $0x3cc] ss:$48 sps:$4 sm:$0xff]   ;;  %v1915_v42 = vld [vmem:[#allocation2 + $0x3c0] ss:$48 sps:$4 sm:$0xff]   ;;  %v1916_v43 = vld [vmem:[#allocation2 + $0x3c8] ss:$48 sps:$4 sm:$0xff]  }
  0x21   :  { %855 = vmatprep.subr.bf16.mxu0 %v1875_v16  ;;  %896 = vmatprep.subr.bf16.mxu1 %v1877_v17  ;;  %v1917_v44 = vld [vmem:[#allocation2 + $0x424] ss:$48 sps:$4 sm:$0xff]   ;;  %v1919_v45 = vld [vmem:[#allocation2 + $0x42c] ss:$48 sps:$4 sm:$0xff]   ;;  %v1921_v47 = vld [vmem:[#allocation2 + $0x420] ss:$48 sps:$4 sm:$0xff]  }
  0x22   :  { %v29_v46 = vld [vmem:[%s2213_s0] sm:$0xff]  ;;  %v1922_v49 = vld [vmem:[#allocation2 + $0x428] ss:$48 sps:$4 sm:$0xff]   ;;  %v1925_v51 = vld [vmem:[#allocation2 + $0x48c] ss:$48 sps:$4 sm:$0xff]   ;;  %vm2119_vm0 = vmmov 0  }
  0x23   :  { %v1564_v48 = vcombine.high %v29_v46, %v29_v46  ;;  %v1923_v50 = vld [vmem:[#allocation2 + $0x484] ss:$48 sps:$4 sm:$0xff]   ;;  %v1927_v52 = vld [vmem:[#allocation2 + $0x480] ss:$48 sps:$4 sm:$0xff]   ;;  %v1928_v53 = vld [vmem:[#allocation2 + $0x488] ss:$48 sps:$4 sm:$0xff]   ;;  %v2155_v4 = vcombine.low %v29_v46, %v29_v46 }
  0x24   :  { %856 = vmatpush1.bf16.msra.mxu0 %v1879_v18  ;;  %897 = vmatpush1.bf16.msra.mxu1 %v1880_v19  ;;  %v1929_v54 = vld [vmem:[#allocation2 + $0x4e4] ss:$48 sps:$4 sm:$0xff]   ;;  %v1931_v55 = vld [vmem:[#allocation2 + $0x4ec] ss:$48 sps:$4 sm:$0xff]   ;;  %v1933_v56 = vld [vmem:[#allocation2 + $0x4e0] ss:$48 sps:$4 sm:$0xff]  }
  0x25   :  { %857 = vmatprep.subr.bf16.mxu0 %v1881_v20  ;;  %898 = vmatprep.subr.bf16.mxu1 %v1883_v21  ;;  %v1934_v57 = vld [vmem:[#allocation2 + $0x4e8] ss:$48 sps:$4 sm:$0xff]   ;;  %v1935_v58 = vld [vmem:[#allocation2 + $0x544] ss:$48 sps:$4 sm:$0xff]   ;;  %v1937_v59 = vld [vmem:[#allocation2 + $0x54c] ss:$48 sps:$4 sm:$0xff]  }
  0x26   :  { %879 = vmatprep.mubr.bf16.mxu0 %v1564_v48  ;;  %920 = vmatprep.mubr.bf16.mxu1 %v1564_v48  ;;  %v1939_v60 = vld [vmem:[#allocation2 + $0x540] ss:$48 sps:$4 sm:$0xff]   ;;  %v1940_v61 = vld [vmem:[#allocation2 + $0x548] ss:$48 sps:$4 sm:$0xff]   ;;  %v1941_v62 = vld [vmem:[#allocation2 + $0x5a4] ss:$48 sps:$4 sm:$0xff]  }
  0x27   :  { %v1943_v63 = vld [vmem:[#allocation2 + $0x5ac] ss:$48 sps:$4 sm:$0xff]   ;;  %v1945_v0 = vld [vmem:[#allocation2 + $0x5a0] ss:$48 sps:$4 sm:$0xff]   ;;  %v1946_v1 = vld [vmem:[#allocation2 + $0x5a8] ss:$48 sps:$4 sm:$0xff]  }
  0x28   :  { %858 = vmatpush1.bf16.msra.mxu0 %v1885_v22  ;;  %899 = vmatpush1.bf16.msra.mxu1 %v1886_v23  ;;  %v1951_v2 = vld [vmem:[#allocation2 + $0x14] ss:$48 sps:$4 sm:$0xff]   ;;  %v1954_v3 = vld [vmem:[#allocation2 + $0x1c] ss:$48 sps:$4 sm:$0xff]   ;;  %v1949_v5 = vld [vmem:[#allocation2 + $0x10] ss:$48 sps:$4 sm:$0xff]  }
  0x29   :  { %859 = vmatprep.subr.bf16.mxu0 %v1887_v24  ;;  %900 = vmatprep.subr.bf16.mxu1 %v1889_v25  ;;  %v1952_v6 = vld [vmem:[#allocation2 + $0x18] ss:$48 sps:$4 sm:$0xff]   ;;  %v1957_v7 = vld [vmem:[#allocation2 + $0x74] ss:$48 sps:$4 sm:$0xff]   ;;  %v1960_v8 = vld [vmem:[#allocation2 + $0x7c] ss:$48 sps:$4 sm:$0xff]  }
  0x2a   :  { %v1955_v9 = vld [vmem:[#allocation2 + $0x70] ss:$48 sps:$4 sm:$0xff]   ;;  %v1958_v10 = vld [vmem:[#allocation2 + $0x78] ss:$48 sps:$4 sm:$0xff]   ;;  %v1963_v11 = vld [vmem:[#allocation2 + $0xd4] ss:$48 sps:$4 sm:$0xff]  }
  0x2b   :  { %v1966_v12 = vld [vmem:[#allocation2 + $0xdc] ss:$48 sps:$4 sm:$0xff]   ;;  %v1961_v13 = vld [vmem:[#allocation2 + $0xd0] ss:$48 sps:$4 sm:$0xff]   ;;  %v1964_v14 = vld [vmem:[#allocation2 + $0xd8] ss:$48 sps:$4 sm:$0xff]  }
  0x2c   :  { %860 = vmatpush1.bf16.msra.mxu0 %v1891_v26  ;;  %901 = vmatpush1.bf16.msra.mxu1 %v1892_v27  ;;  %v1969_v15 = vld [vmem:[#allocation2 + $0x134] ss:$48 sps:$4 sm:$0xff]   ;;  %v1972_v16 = vld [vmem:[#allocation2 + $0x13c] ss:$48 sps:$4 sm:$0xff]   ;;  %v1967_v17 = vld [vmem:[#allocation2 + $0x130] ss:$48 sps:$4 sm:$0xff]  }
  0x2d   :  { %861 = vmatprep.subr.bf16.mxu0 %v1893_v28  ;;  %902 = vmatprep.subr.bf16.mxu1 %v1895_v29  ;;  %v1970_v18 = vld [vmem:[#allocation2 + $0x138] ss:$48 sps:$4 sm:$0xff]   ;;  %v1975_v19 = vld [vmem:[#allocation2 + $0x194] ss:$48 sps:$4 sm:$0xff]   ;;  %v1978_v20 = vld [vmem:[#allocation2 + $0x19c] ss:$48 sps:$4 sm:$0xff]  }
  0x2e   :  { %v1973_v21 = vld [vmem:[#allocation2 + $0x190] ss:$48 sps:$4 sm:$0xff]   ;;  %v1976_v22 = vld [vmem:[#allocation2 + $0x198] ss:$48 sps:$4 sm:$0xff]   ;;  %v1981_v23 = vld [vmem:[#allocation2 + $0x1f4] ss:$48 sps:$4 sm:$0xff]  }
  0x2f   :  { %v1984_v24 = vld [vmem:[#allocation2 + $0x1fc] ss:$48 sps:$4 sm:$0xff]   ;;  %v1979_v25 = vld [vmem:[#allocation2 + $0x1f0] ss:$48 sps:$4 sm:$0xff]   ;;  %v1982_v26 = vld [vmem:[#allocation2 + $0x1f8] ss:$48 sps:$4 sm:$0xff]  }
  0x30   :  { %862 = vmatpush1.bf16.msra.mxu0 %v1897_v30  ;;  %903 = vmatpush1.bf16.msra.mxu1 %v1898_v31  ;;  %v1987_v27 = vld [vmem:[#allocation2 + $0x254] ss:$48 sps:$4 sm:$0xff]   ;;  %v1990_v28 = vld [vmem:[#allocation2 + $0x25c] ss:$48 sps:$4 sm:$0xff]   ;;  %v1985_v29 = vld [vmem:[#allocation2 + $0x250] ss:$48 sps:$4 sm:$0xff]  }
  0x31   :  { %863 = vmatprep.subr.bf16.mxu0 %v1899_v32  ;;  %904 = vmatprep.subr.bf16.mxu1 %v1901_v33  ;;  %v1988_v30 = vld [vmem:[#allocation2 + $0x258] ss:$48 sps:$4 sm:$0xff]   ;;  %v1993_v31 = vld [vmem:[#allocation2 + $0x2b4] ss:$48 sps:$4 sm:$0xff]   ;;  %v1996_v32 = vld [vmem:[#allocation2 + $0x2bc] ss:$48 sps:$4 sm:$0xff]  }
  0x32   :  { %v1991_v33 = vld [vmem:[#allocation2 + $0x2b0] ss:$48 sps:$4 sm:$0xff]   ;;  %v2012_v46 = vld [vmem:[#allocation2 + $0x3d8] ss:$48 sps:$4 sm:$0xff]  }
  0x34   :  { %864 = vmatpush1.bf16.msra.mxu0 %v1903_v34  ;;  %905 = vmatpush1.bf16.msra.mxu1 %v1904_v35  ;;  %v1994_v34 = vld [vmem:[#allocation2 + $0x2b8] ss:$48 sps:$4 sm:$0xff]   ;;  %v1999_v35 = vld [vmem:[#allocation2 + $0x314] ss:$48 sps:$4 sm:$0xff]  }
  0x35   :  { %865 = vmatprep.subr.bf16.mxu0 %v1905_v36  ;;  %906 = vmatprep.subr.bf16.mxu1 %v1907_v37  ;;  %v2002_v36 = vld [vmem:[#allocation2 + $0x31c] ss:$48 sps:$4 sm:$0xff]   ;;  %v1997_v37 = vld [vmem:[#allocation2 + $0x310] ss:$48 sps:$4 sm:$0xff]  }
  0x38   :  { %866 = vmatpush1.bf16.msra.mxu0 %v1909_v38  ;;  %907 = vmatpush1.bf16.msra.mxu1 %v1910_v39  ;;  %v2000_v38 = vld [vmem:[#allocation2 + $0x318] ss:$48 sps:$4 sm:$0xff]   ;;  %v2005_v39 = vld [vmem:[#allocation2 + $0x374] ss:$48 sps:$4 sm:$0xff]  }
  0x39   :  { %867 = vmatprep.subr.bf16.mxu0 %v1911_v40  ;;  %908 = vmatprep.subr.bf16.mxu1 %v1913_v41  ;;  %v2008_v40 = vld [vmem:[#allocation2 + $0x37c] ss:$48 sps:$4 sm:$0xff]   ;;  %v2003_v41 = vld [vmem:[#allocation2 + $0x370] ss:$48 sps:$4 sm:$0xff]  }
  0x3c   :  { %868 = vmatpush1.bf16.msra.mxu0 %v1915_v42  ;;  %909 = vmatpush1.bf16.msra.mxu1 %v1916_v43  ;;  %v2006_v42 = vld [vmem:[#allocation2 + $0x378] ss:$48 sps:$4 sm:$0xff]   ;;  %v2011_v43 = vld [vmem:[#allocation2 + $0x3d4] ss:$48 sps:$4 sm:$0xff]  }
  0x3d   :  { %869 = vmatprep.subr.bf16.mxu0 %v1917_v44  ;;  %910 = vmatprep.subr.bf16.mxu1 %v1919_v45  ;;  %v2014_v44 = vld [vmem:[#allocation2 + $0x3dc] ss:$48 sps:$4 sm:$0xff]   ;;  %v2009_v45 = vld [vmem:[#allocation2 + $0x3d0] ss:$48 sps:$4 sm:$0xff]  }
  0x40   :  { %870 = vmatpush1.bf16.msra.mxu0 %v1921_v47  ;;  %911 = vmatpush1.bf16.msra.mxu1 %v1922_v49  ;;  %v2017_v47 = vld [vmem:[#allocation2 + $0x434] ss:$48 sps:$4 sm:$0xff]   ;;  %v2015_v49 = vld [vmem:[#allocation2 + $0x430] ss:$48 sps:$4 sm:$0xff]  }
  0x41   :  { %871 = vmatprep.subr.bf16.mxu0 %v1923_v50  ;;  %912 = vmatprep.subr.bf16.mxu1 %v1925_v51  ;;  %v2018_v50 = vld [vmem:[#allocation2 + $0x438] ss:$48 sps:$4 sm:$0xff]   ;;  %v2023_v51 = vld [vmem:[#allocation2 + $0x494] ss:$48 sps:$4 sm:$0xff]  }
  0x44   :  { %872 = vmatpush1.bf16.msra.mxu0 %v1927_v52  ;;  %913 = vmatpush1.bf16.msra.mxu1 %v1928_v53  ;;  %v2026_v52 = vld [vmem:[#allocation2 + $0x49c] ss:$48 sps:$4 sm:$0xff]   ;;  %v2021_v53 = vld [vmem:[#allocation2 + $0x490] ss:$48 sps:$4 sm:$0xff]  }
  0x45   :  { %873 = vmatprep.subr.bf16.mxu0 %v1929_v54  ;;  %914 = vmatprep.subr.bf16.mxu1 %v1931_v55  ;;  %v2024_v54 = vld [vmem:[#allocation2 + $0x498] ss:$48 sps:$4 sm:$0xff]   ;;  %v2029_v55 = vld [vmem:[#allocation2 + $0x4f4] ss:$48 sps:$4 sm:$0xff]  }
  0x48   :  { %874 = vmatpush1.bf16.msra.mxu0 %v1933_v56  ;;  %915 = vmatpush1.bf16.msra.mxu1 %v1934_v57  ;;  %v2032_v56 = vld [vmem:[#allocation2 + $0x4fc] ss:$48 sps:$4 sm:$0xff]   ;;  %v2027_v57 = vld [vmem:[#allocation2 + $0x4f0] ss:$48 sps:$4 sm:$0xff]  }
  0x49   :  { %875 = vmatprep.subr.bf16.mxu0 %v1935_v58  ;;  %916 = vmatprep.subr.bf16.mxu1 %v1937_v59  ;;  %v2030_v58 = vld [vmem:[#allocation2 + $0x4f8] ss:$48 sps:$4 sm:$0xff]   ;;  %v2035_v59 = vld [vmem:[#allocation2 + $0x554] ss:$48 sps:$4 sm:$0xff]  }
  0x4c   :  { %876 = vmatpush1.bf16.msra.mxu0 %v1939_v60  ;;  %917 = vmatpush1.bf16.msra.mxu1 %v1940_v61  ;;  %v2038_v60 = vld [vmem:[#allocation2 + $0x55c] ss:$48 sps:$4 sm:$0xff]   ;;  %v2033_v61 = vld [vmem:[#allocation2 + $0x550] ss:$48 sps:$4 sm:$0xff]  }
  0x4d   :  { %877 = vmatprep.subr.bf16.mxu0 %v1941_v62  ;;  %918 = vmatprep.subr.bf16.mxu1 %v1943_v63  ;;  %v2036_v62 = vld [vmem:[#allocation2 + $0x558] ss:$48 sps:$4 sm:$0xff]   ;;  %v2041_v63 = vld [vmem:[#allocation2 + $0x5b4] ss:$48 sps:$4 sm:$0xff]  }
  0x50   :  { %878 = vmatpush1.bf16.msra.mxu0 %v1945_v0  ;;  %919 = vmatpush1.bf16.msra.mxu1 %v1946_v1  ;;  %v2044_v0 = vld [vmem:[#allocation2 + $0x5bc] ss:$48 sps:$4 sm:$0xff]   ;;  %v2039_v1 = vld [vmem:[#allocation2 + $0x5b0] ss:$48 sps:$4 sm:$0xff]  }
  0x51   :  { %929 = vmatprep.subr.bf16.mxu0 %v1951_v2  ;;  %970 = vmatprep.subr.bf16.mxu1 %v1954_v3  ;;  %v2042_v2 = vld [vmem:[#allocation2 + $0x5b8] ss:$48 sps:$4 sm:$0xff]   ;;  %v2045_v3 = vld [vmem:[#allocation2 + $0x320] ss:$48 sps:$4 sm:$0xff]  }
  0x53   :  { %880 = vmatmul.mubr.bf16.vlgmr.msra.gmra.mrb[0].mxu0 %v2155_v4  ;;  %921 = vmatmul.mubr.bf16.vlgmr.msra.gmra.mrb[0].mxu1 %v2155_v4 }
  0x54   :  { %930 = vmatpush1.bf16.msra.mxu0 %v1949_v5  ;;  %971 = vmatpush1.bf16.msra.mxu1 %v1952_v6  ;;  %v2046_v5 = vld [vmem:[#allocation2 + $0x20] ss:$48 sps:$4 sm:$0xff]  }
  0x55   :  { %931 = vmatprep.subr.bf16.mxu0 %v1957_v7  ;;  %972 = vmatprep.subr.bf16.mxu1 %v1960_v8  ;;  %v2047_v6 = vld [vmem:[#allocation2 + $0x380] ss:$48 sps:$4 sm:$0xff]  }
  0x56   :  { %961 = vmatprep.mubr.bf16.mxu0 %v1564_v48  ;;  %1002 = vmatprep.mubr.bf16.mxu1 %v1564_v48  ;;  %v2020_v48 = vld [vmem:[#allocation2 + $0x43c] ss:$48 sps:$4 sm:$0xff]   ;;  %v2048_v7 = vld [vmem:[#allocation2 + $0x80] ss:$48 sps:$4 sm:$0xff]  }
  0x57   :  { %v2049_v8 = vld [vmem:[#allocation2 + $0x3e0] ss:$48 sps:$4 sm:$0xff]  }
  0x58   :  { %932 = vmatpush1.bf16.msra.mxu0 %v1955_v9  ;;  %973 = vmatpush1.bf16.msra.mxu1 %v1958_v10  ;;  %v2050_v9 = vld [vmem:[#allocation2 + $0xe0] ss:$48 sps:$4 sm:$0xff]  }
  0x59   :  { %933 = vmatprep.subr.bf16.mxu0 %v1963_v11  ;;  %974 = vmatprep.subr.bf16.mxu1 %v1966_v12  ;;  %v2051_v10 = vld [vmem:[#allocation2 + $0x440] ss:$48 sps:$4 sm:$0xff]  }
  0x5a   :  { %v2052_v11 = vld [vmem:[#allocation2 + $0x140] ss:$48 sps:$4 sm:$0xff]  }
  0x5b   :  { %v2053_v12 = vld [vmem:[#allocation2 + $0x4a0] ss:$48 sps:$4 sm:$0xff]  }
  0x5c   :  { %934 = vmatpush1.bf16.msra.mxu0 %v1961_v13  ;;  %975 = vmatpush1.bf16.msra.mxu1 %v1964_v14  ;;  %v2054_v13 = vld [vmem:[#allocation2 + $0x1a0] ss:$48 sps:$4 sm:$0xff]  }
  0x5d   :  { %935 = vmatprep.subr.bf16.mxu0 %v1969_v15  ;;  %976 = vmatprep.subr.bf16.mxu1 %v1972_v16  ;;  %v2056_v14 = vld [vmem:[#allocation2 + $0x200] ss:$48 sps:$4 sm:$0xff]  }
  0x5e   :  { %v2057_v15 = vld [vmem:[#allocation2 + $0x560] ss:$48 sps:$4 sm:$0xff]  }
  0x5f   :  { %v2058_v16 = vld [vmem:[#allocation2 + $0x260] ss:$48 sps:$4 sm:$0xff]  }
  0x60   :  { %936 = vmatpush1.bf16.msra.mxu0 %v1967_v17  ;;  %977 = vmatpush1.bf16.msra.mxu1 %v1970_v18  ;;  %v2059_v17 = vld [vmem:[#allocation2 + $0x5c0] ss:$48 sps:$4 sm:$0xff]  }
  0x61   :  { %937 = vmatprep.subr.bf16.mxu0 %v1975_v19  ;;  %978 = vmatprep.subr.bf16.mxu1 %v1978_v20  ;;  %v2060_v18 = vld [vmem:[#allocation2 + $0x2c0] ss:$48 sps:$4 sm:$0xff]   ;;  %v2061_v19 = vld [vmem:[#allocation2 + $0x24] ss:$48 sps:$4 sm:$0xff]   ;;  %v2118_v20 = vmov 0.0  }
  0x64   :  { %938 = vmatpush1.bf16.msra.mxu0 %v1973_v21  ;;  %979 = vmatpush1.bf16.msra.mxu1 %v1976_v22  ;;  %v2062_v21 = vld [vmem:[#allocation2 + $0x84] ss:$48 sps:$4 sm:$0xff]  }
  0x65   :  { %939 = vmatprep.subr.bf16.mxu0 %v1981_v23  ;;  %980 = vmatprep.subr.bf16.mxu1 %v1984_v24  ;;  %v2063_v22 = vld [vmem:[#allocation2 + $0xe4] ss:$48 sps:$4 sm:$0xff]  }
  0x66   :  { %v2064_v23 = vld [vmem:[#allocation2 + $0x144] ss:$48 sps:$4 sm:$0xff]  }
  0x67   :  { %v2065_v24 = vld [vmem:[#allocation2 + $0x1a4] ss:$48 sps:$4 sm:$0xff]  }
  0x68   :  { %940 = vmatpush1.bf16.msra.mxu0 %v1979_v25  ;;  %981 = vmatpush1.bf16.msra.mxu1 %v1982_v26  ;;  %v2066_v25 = vld [vmem:[#allocation2 + $0x204] ss:$48 sps:$4 sm:$0xff]   ;;  %v160_v26 = vlaneseq }
  0x69   :  { %941 = vmatprep.subr.bf16.mxu0 %v1987_v27  ;;  %982 = vmatprep.subr.bf16.mxu1 %v1990_v28 }
  0x6a   :  { %v161_v27 = vshrl.u32 %v160_v26, 7 }
  0x6c   :  { %942 = vmatpush1.bf16.msra.mxu0 %v1985_v29  ;;  %983 = vmatpush1.bf16.msra.mxu1 %v1988_v30  ;;  %v162_v28 = vsub.s32 0, %v161_v27  ;;  %v170_v29 = vsub.s32 2, %v161_v27  ;;  %v158_v30 = vld [vmem:[%s2215_s2] sm:$0xff] }
  0x6d   :  { %943 = vmatprep.subr.bf16.mxu0 %v1993_v31  ;;  %984 = vmatprep.subr.bf16.mxu1 %v1996_v32  ;;  %v166_v31 = vsub.s32 1, %v161_v27  ;;  %v174_v32 = vsub.s32 3, %v161_v27 }
  0x70   :  { %944 = vmatpush1.bf16.msra.mxu0 %v1991_v33  ;;  %985 = vmatpush1.bf16.msra.mxu1 %v1994_v34  ;;  %v163_v33 = vrot.slane %v158_v30, %v162_v28  ;;  %v171_v34 = vrot.slane %v158_v30, %v170_v29  ;;  %v2072_v28 = vld [vmem:[#allocation2 + $0x148] ss:$48 sps:$4 sm:$0xff]  }
  0x71   :  { %945 = vmatprep.subr.bf16.mxu0 %v1999_v35  ;;  %986 = vmatprep.subr.bf16.mxu1 %v2002_v36  ;;  %v167_v35 = vrot.slane %v158_v30, %v166_v31  ;;  %v175_v36 = vrot.slane %v158_v30, %v174_v32  ;;  %v2073_v29 = vld [vmem:[#allocation2 + $0x1a8] ss:$48 sps:$4 sm:$0xff]  }
  0x72   :  { %v1693_v32 = vld [vmem:[%s2215_s2 + $0x8] ss:$0 sm:$0xff] }
  0x74   :  { %946 = vmatpush1.bf16.msra.mxu0 %v1997_v37  ;;  %987 = vmatpush1.bf16.msra.mxu1 %v2000_v38 }
  0x75   :  { %947 = vmatprep.subr.bf16.mxu0 %v2005_v39  ;;  %988 = vmatprep.subr.bf16.mxu1 %v2008_v40 }
  0x78   :  { %948 = vmatpush1.bf16.msra.mxu0 %v2003_v41  ;;  %989 = vmatpush1.bf16.msra.mxu1 %v2006_v42 }
  0x79   :  { %949 = vmatprep.subr.bf16.mxu0 %v2011_v43  ;;  %990 = vmatprep.subr.bf16.mxu1 %v2014_v44 }
  0x7c   :  { %950 = vmatpush1.bf16.msra.mxu0 %v2009_v45  ;;  %991 = vmatpush1.bf16.msra.mxu1 %v2012_v46 }
  0x7d   :  { %951 = vmatprep.subr.bf16.mxu0 %v2017_v47  ;;  %992 = vmatprep.subr.bf16.mxu1 %v2020_v48 }
  0x80   :  { %952 = vmatpush1.bf16.msra.mxu0 %v2015_v49  ;;  %993 = vmatpush1.bf16.msra.mxu1 %v2018_v50 }
  0x81   :  { %953 = vmatprep.subr.bf16.mxu0 %v2023_v51  ;;  %994 = vmatprep.subr.bf16.mxu1 %v2026_v52 }
  0x84   :  { %954 = vmatpush1.bf16.msra.mxu0 %v2021_v53  ;;  %995 = vmatpush1.bf16.msra.mxu1 %v2024_v54 }
  0x85   :  { %955 = vmatprep.subr.bf16.mxu0 %v2029_v55  ;;  %996 = vmatprep.subr.bf16.mxu1 %v2032_v56  ;;  %v178_v55 = vsub.s32 4, %v161_v27  ;;  %v186_v56 = vsub.s32 6, %v161_v27 }
  0x88   :  { %956 = vmatpush1.bf16.msra.mxu0 %v2027_v57  ;;  %997 = vmatpush1.bf16.msra.mxu1 %v2030_v58  ;;  %v182_v57 = vsub.s32 5, %v161_v27  ;;  %v190_v58 = vsub.s32 7, %v161_v27  ;;  %v2071_v27 = vld [vmem:[#allocation2 + $0xe8] ss:$48 sps:$4 sm:$0xff]  }
  0x89   :  { %957 = vmatprep.subr.bf16.mxu0 %v2035_v59  ;;  %998 = vmatprep.subr.bf16.mxu1 %v2038_v60  ;;  %v179_v59 = vrot.slane %v158_v30, %v178_v55  ;;  %v187_v60 = vrot.slane %v158_v30, %v186_v56  ;;  %v2082_v55 = vld [vmem:[#allocation2 + $0x20c] ss:$48 sps:$4 sm:$0xff]  }
  0x8a   :  { %v2083_v56 = vld [vmem:[#allocation2 + $0x26c] ss:$48 sps:$4 sm:$0xff]  }
  0x8c   :  { %958 = vmatpush1.bf16.msra.mxu0 %v2033_v61  ;;  %999 = vmatpush1.bf16.msra.mxu1 %v2036_v62  ;;  %v183_v61 = vrot.slane %v158_v30, %v182_v57  ;;  %v191_v62 = vrot.slane %v158_v30, %v190_v58  ;;  %v2074_v30 = vld [vmem:[#allocation2 + $0x208] ss:$48 sps:$4 sm:$0xff]   ;;  %v2084_v57 = vld [vmem:[#allocation2 + $0x2cc] ss:$48 sps:$4 sm:$0xff]  }
  0x8d   :  { %959 = vmatprep.subr.bf16.mxu0 %v2041_v63  ;;  %1000 = vmatprep.subr.bf16.mxu1 %v2044_v0  ;;  %v1719_v58 = vld [vmem:[%s2215_s2 + $0xa] ss:$0 sm:$0xff] }
  0x90   :  { %960 = vmatpush1.bf16.msra.mxu0 %v2039_v1  ;;  %1001 = vmatpush1.bf16.msra.mxu1 %v2042_v2 }
  0x91   :  { %1737 = vmatprep.subr.bf16.mxu0 %v2045_v3  ;;  %1786 = vmatprep.subr.bf16.mxu1 %v2118_v20 }
  0x93   :  { %962 = vmatmul.mubr.bf16.vlgmr.msra.gmra.mrb[4].mxu0 %v2155_v4  ;;  %1003 = vmatmul.mubr.bf16.vlgmr.msra.gmra.mrb[4].mxu1 %v2155_v4  ;;  %v2055_v4 = vld [vmem:[#allocation2 + $0x500] ss:$48 sps:$4 sm:$0xff]  }
  0x94   :  { %1738 = vmatpush3.bf16.msra.mxu0 %v2046_v5  ;;  %1787 = vmatpush3.bf16.msra.mxu1 %v2061_v19 }
  0x95   :  { %1739 = vmatprep.subr.bf16.mxu0 %v2047_v6  ;;  %1788 = vmatprep.subr.bf16.mxu1 %v2118_v20 }
  0x96   :  { %1802 = vmatprep.mubr.msk.bf16.mxu1 %vm2119_vm0, %v2118_v20 }
  0x98   :  { %1740 = vmatpush3.bf16.msra.mxu0 %v2048_v7  ;;  %1789 = vmatpush3.bf16.msra.mxu1 %v2062_v21 }
  0x99   :  { %1741 = vmatprep.subr.bf16.mxu0 %v2049_v8  ;;  %1790 = vmatprep.subr.bf16.mxu1 %v2118_v20 }
  0x9c   :  { %1742 = vmatpush3.bf16.msra.mxu0 %v2050_v9  ;;  %1791 = vmatpush3.bf16.msra.mxu1 %v2063_v22  ;;  %v2067_v22 = vld [vmem:[#allocation2 + $0x264] ss:$48 sps:$4 sm:$0xff]  }
  0x9d   :  { %1743 = vmatprep.subr.bf16.mxu0 %v2051_v10  ;;  %1792 = vmatprep.subr.bf16.mxu1 %v2118_v20 }
  0xa0   :  { %1744 = vmatpush3.bf16.msra.mxu0 %v2052_v11  ;;  %1793 = vmatpush3.bf16.msra.mxu1 %v2064_v23  ;;  %v2068_v23 = vld [vmem:[#allocation2 + $0x2c4] ss:$48 sps:$4 sm:$0xff]  }
  0xa1   :  { %1745 = vmatprep.subr.bf16.mxu0 %v2053_v12  ;;  %1794 = vmatprep.subr.bf16.mxu1 %v2118_v20 }
  0xa4   :  { %1746 = vmatpush3.bf16.msra.mxu0 %v2054_v13  ;;  %1795 = vmatpush3.bf16.msra.mxu1 %v2065_v24  ;;  %v2069_v24 = vld [vmem:[#allocation2 + $0x28] ss:$48 sps:$4 sm:$0xff]  }
  0xa5   :  { %1747 = vmatprep.subr.bf16.mxu0 %v2055_v4  ;;  %1796 = vmatprep.subr.bf16.mxu1 %v2118_v20 }
  0xa8   :  { %1748 = vmatpush3.bf16.msra.mxu0 %v2056_v14  ;;  %1797 = vmatpush3.bf16.msra.mxu1 %v2066_v25  ;;  %v2070_v25 = vld [vmem:[#allocation2 + $0x88] ss:$48 sps:$4 sm:$0xff]  }
  0xa9   :  { %1749 = vmatprep.subr.bf16.mxu0 %v2057_v15  ;;  %1798 = vmatprep.subr.bf16.mxu1 %v2118_v20 }
  0xac   :  { %1750 = vmatpush3.bf16.msra.mxu0 %v2058_v16  ;;  %1799 = vmatpush3.bf16.msra.mxu1 %v2067_v22 }
  0xad   :  { %1751 = vmatprep.subr.bf16.mxu0 %v2059_v17  ;;  %1800 = vmatprep.subr.bf16.mxu1 %v2118_v20 }
  0xb0   :  { %1752 = vmatpush3.bf16.msra.mxu0 %v2060_v18  ;;  %1801 = vmatpush3.bf16.msra.mxu1 %v2068_v23 }
  0xb1   :  { %1806 = vmatprep.subr.bf16.mxu0 %v2118_v20  ;;  %1826 = vmatprep.subr.bf16.mxu1 %v2118_v20 }
 0x126   :  { %v881_v37 = vpop.f32.mrb[0].mxu0  ;;  %v922_v38 = vpop.f32.mrb[0].mxu1 }
 0x127   :  { %v882_v39 = vadd.f32 %v881_v37, %v163_v33  ;;  %v923_v40 = vadd.f32 %v922_v38, %v171_v34  ;;  %v883_v41 = vpop.f32.mrb[1].mxu0  ;;  %v924_v42 = vpop.f32.mrb[1].mxu1 }
 0x128   :  { %v884_v43 = vadd.f32 %v883_v41, %v167_v35  ;;  %v925_v44 = vadd.f32 %v924_v42, %v175_v36  ;;  %v885_v45 = vpop.f32.mrb[2].mxu0  ;;  %v926_v46 = vpop.f32.mrb[2].mxu1  ;;  %v2076_v41 = vld [vmem:[#allocation2 + $0x2c8] ss:$48 sps:$4 sm:$0xff]   ;;  %v2077_v42 = vld [vmem:[#allocation2 + $0x2c] ss:$48 sps:$4 sm:$0xff]  }
 0x129   :  { %v1011_v47 = vmax.f32 %v882_v39, 0.0  ;;  %v1013_v48 = vmax.f32 %v923_v40, 0.0  ;;  %v886_v49 = vpop.f32.mrb[3].mxu0  ;;  %v927_v50 = vpop.f32.mrb[3].mxu1  ;;  %v2075_v40 = vld [vmem:[#allocation2 + $0x268] ss:$48 sps:$4 sm:$0xff]  }
 0x12a   :  { %v1012_v51 = vmax.f32 %v884_v43, 0.0  ;;  %v1014_v52 = vmax.f32 %v925_v44, 0.0  ;;  %v2078_v43 = vld [vmem:[#allocation2 + $0x8c] ss:$48 sps:$4 sm:$0xff]   ;;  %v1710_v46 = vld [vmem:[%s2215_s2 + $0x9] ss:$0 sm:$0xff] }
 0x12b   :  { %v1019_v53 = vmax.f32 %v1011_v47, %v1013_v48  ;;  %v2079_v44 = vld [vmem:[#allocation2 + $0xec] ss:$48 sps:$4 sm:$0xff]  }
 0x12c   :  { %v1020_v54 = vmax.f32 %v1012_v51, %v1014_v52  ;;  %v2080_v45 = vld [vmem:[#allocation2 + $0x14c] ss:$48 sps:$4 sm:$0xff]  }
 0x166   :  { %v963_v63 = vpop.f32.mrb[4].mxu0  ;;  %v1004_v0 = vpop.f32.mrb[4].mxu1 }
 0x167   :  { %v964_v1 = vadd.f32 %v963_v63, %v179_v59  ;;  %v1005_v2 = vadd.f32 %v1004_v0, %v187_v60  ;;  %v965_v3 = vpop.f32.mrb[5].mxu0  ;;  %v1006_v5 = vpop.f32.mrb[5].mxu1 }
 0x168   :  { %v966_v6 = vadd.f32 %v965_v3, %v183_v61  ;;  %v1007_v7 = vadd.f32 %v1006_v5, %v191_v62  ;;  %v967_v8 = vpop.f32.mrb[6].mxu0  ;;  %v1008_v9 = vpop.f32.mrb[6].mxu1 }
 0x169   :  { %v1015_v10 = vmax.f32 %v964_v1, 0.0  ;;  %v1017_v11 = vmax.f32 %v1005_v2, 0.0  ;;  %v968_v12 = vpop.f32.mrb[7].mxu0  ;;  %v1009_v13 = vpop.f32.mrb[7].mxu1  ;;  %v1542_v2 = vand.u32 127, %v160_v26 }
 0x16a   :  { %v1016_v4 = vmax.f32 %v966_v6, 0.0  ;;  %v1018_v14 = vmax.f32 %v1007_v7, 0.0 }
 0x16b   :  { %v1021_v15 = vmax.f32 %v1015_v10, %v1017_v11  ;;  %vm1543_vm1 = vcmp.lt.s32.totalorder %v1542_v2, 7 }
 0x16c   :  { %v1022_v16 = vmax.f32 %v1016_v4, %v1018_v14 }
 0x16d   :  { %v1023_v17 = vmax.f32 %v1019_v53, %v1021_v15 }
 0x16e   :  { %v1024_v18 = vmax.f32 %v1020_v54, %v1022_v16  ;;  %v2081_v54 = vld [vmem:[#allocation2 + $0x1ac] ss:$48 sps:$4 sm:$0xff]  }
 0x16f   :  { %v1025_v21 = vpack.c.bf16 %v1023_v17, %v1023_v17 }
 0x170   :  { %v1026_v19 = vpack.c.bf16 %v1024_v18, %v1024_v18 }
 0x172   :  { %1194 = vmatprep.mubr.bf16.mxu0 %v1026_v19 }
 0x173   :  { %1195 = vmatmul.mubr.bf16.vlgmr.msra.gmra.mrb[8].mxu0 %v1025_v21 }
 0x174   :  { %1822 = vmatprep.mubr.msk.bf16.mxu0 %vm2119_vm0, %v2118_v20  ;;  %1807 = vmatpush3.bf16.msra.mxu0 %v2069_v24 }
 0x175   :  { %1808 = vmatprep.subr.bf16.mxu0 %v2118_v20 }
 0x178   :  { %1809 = vmatpush3.bf16.msra.mxu0 %v2070_v25 }
 0x179   :  { %1810 = vmatprep.subr.bf16.mxu0 %v2118_v20 }
 0x17c   :  { %1811 = vmatpush3.bf16.msra.mxu0 %v2071_v27 }
 0x17d   :  { %1812 = vmatprep.subr.bf16.mxu0 %v2118_v20 }
 0x180   :  { %1813 = vmatpush3.bf16.msra.mxu0 %v2072_v28 }
 0x181   :  { %1814 = vmatprep.subr.bf16.mxu0 %v2118_v20 }
 0x184   :  { %1815 = vmatpush3.bf16.msra.mxu0 %v2073_v29 }
 0x185   :  { %1816 = vmatprep.subr.bf16.mxu0 %v2118_v20 }
 0x188   :  { %1817 = vmatpush3.bf16.msra.mxu0 %v2074_v30 }
 0x189   :  { %1818 = vmatprep.subr.bf16.mxu0 %v2118_v20 }
 0x18c   :  { %1819 = vmatpush3.bf16.msra.mxu0 %v2075_v40 }
 0x18d   :  { %1820 = vmatprep.subr.bf16.mxu0 %v2118_v20 }
 0x190   :  { %1821 = vmatpush3.bf16.msra.mxu0 %v2076_v41 }
 0x246   :  { %v1753_v31 = vpop.f32.mrb[8].mxu0 }
 0x247   :  { %v1754_v33 = vpop.f32.mrb[9].mxu0 }
 0x248   :  { %v1755_v34 = vadd.f32 %v1754_v33, %v1753_v31  ;;  %v1756_v35 = vpop.f32.mrb[10].mxu0 }
 0x249   :  { %v1757_v36 = vpop.f32.mrb[11].mxu0 }
 0x24a   :  { %v1197_v37 = vadd.f32 %v1755_v34, %v1693_v32 }
 0x24c   :  { %v1202_v38 = vmax.f32 %v1197_v37, 0.0 }
 0x24e   :  { %v1203_v39 = vpack.c.bf16 %v1202_v38, %v1202_v38 }
 0x250   :  { %1803 = vmatmul.mubr.bf16.vlgmr.msra.gmra.mrb[8].mxu1 %v1203_v39 }
 0x251   :  { %1842 = vmatprep.mubr.msk.bf16.mxu1 %vm2119_vm0, %v2118_v20  ;;  %1827 = vmatpush3.bf16.msra.mxu1 %v2077_v42 }
 0x252   :  { %1828 = vmatprep.subr.bf16.mxu1 %v2118_v20 }
 0x255   :  { %1829 = vmatpush3.bf16.msra.mxu1 %v2078_v43 }
 0x256   :  { %1830 = vmatprep.subr.bf16.mxu1 %v2118_v20 }
 0x259   :  { %1831 = vmatpush3.bf16.msra.mxu1 %v2079_v44 }
 0x25a   :  { %1832 = vmatprep.subr.bf16.mxu1 %v2118_v20 }
 0x25d   :  { %1833 = vmatpush3.bf16.msra.mxu1 %v2080_v45 }
 0x25e   :  { %1834 = vmatprep.subr.bf16.mxu1 %v2118_v20 }
 0x261   :  { %1835 = vmatpush3.bf16.msra.mxu1 %v2081_v54 }
 0x262   :  { %1836 = vmatprep.subr.bf16.mxu1 %v2118_v20 }
 0x265   :  { %1837 = vmatpush3.bf16.msra.mxu1 %v2082_v55 }
 0x266   :  { %1838 = vmatprep.subr.bf16.mxu1 %v2118_v20 }
 0x269   :  { %1839 = vmatpush3.bf16.msra.mxu1 %v2083_v56 }
 0x26a   :  { %1840 = vmatprep.subr.bf16.mxu1 %v2118_v20  ;;  %v1728_v20 = vld [vmem:[%s2215_s2 + $0xb] ss:$0 sm:$0xff] }
 0x26d   :  { %1841 = vmatpush3.bf16.msra.mxu1 %v2084_v57 }
 0x323   :  { %v1309_v47 = vpop.f32.mrb[8].mxu1 }
 0x324   :  { %v1310_v48 = vadd.f32 %v1710_v46, %v1309_v47  ;;  %v1804_v49 = vpop.f32.mrb[9].mxu1 }
 0x325   :  { %v1312_v50 = vpop.f32.mrb[10].mxu1 }
 0x326   :  { %v1315_v51 = vmax.f32 %v1310_v48, 0.0  ;;  %v1805_v52 = vpop.f32.mrb[11].mxu1 }
 0x328   :  { %v1316_v53 = vpack.c.bf16 %v1315_v51, %v1315_v51 }
 0x32a   :  { %1823 = vmatmul.mubr.bf16.vlgmr.msra.gmra.mrb[12].mxu0 %v1316_v53 }
 0x3fd   :  { %v1422_v59 = vpop.f32.mrb[12].mxu0 }
 0x3fe   :  { %v1423_v60 = vadd.f32 %v1719_v58, %v1422_v59  ;;  %v1824_v61 = vpop.f32.mrb[13].mxu0 }
 0x3ff   :  { %v1425_v62 = vpop.f32.mrb[14].mxu0 }
 0x400   :  { %2085 = vtanh.f32 %v1423_v60  ;;  %v1825_v63 = vpop.f32.mrb[15].mxu0 }
 0x40a   :  { %v2086_v0 = vpop.eup %2085 }
 0x40b   :  { %v1429_v1 = vpack.c.bf16 %v2086_v0, %v2086_v0 }
 0x40d   :  { %1843 = vmatmul.mubr.bf16.vlgmr.msra.gmra.mrb[12].mxu1 %v1429_v1 }
 0x4e0   :  { %v1535_v3 = vpop.f32.mrb[12].mxu1 }
 0x4e1   :  { %v1536_v5 = vadd.f32 %v1728_v20, %v1535_v3  ;;  %v1844_v6 = vpop.f32.mrb[13].mxu1 }
 0x4e2   :  { %v1538_v7 = vpop.f32.mrb[14].mxu1 }
 0x4e3   :  { %v1845_v8 = vpop.f32.mrb[15].mxu1  ;;  %v1544_v9 = vsel %vm1543_vm1, %v1536_v5, -1e+30 }
 0x4e4   :  { %1545 = vmax.xlane.f32.xlu0 %v1544_v9 }
 0x571   :  { %v1546_v10 = vpop.xlane.xlu0 %1545 }
 0x572   :  { %v1547_v11 = vsub.f32 %v1544_v9, %v1546_v10  ;;  %v1554_v14 = vsub.f32 %v1536_v5, %v1546_v10 }
 0x574   :  { %v1548_v12 = vmul.f32 1.442695, %v1547_v11 }
 0x576   :  { %2087 = vpow2.f32 %v1548_v12 }
 0x580   :  { %v2088_v13 = vpop.eup %2087 }
 0x581   :  { %1550 = vadd.xlane.f32.xlu0 %v2088_v13 }
 0x60e   :  { %v1551_v26 = vpop.xlane.xlu0 %1550 }
 0x60f   :  { %2089 = vlog2.f32 %v1551_v26 }
 0x619   :  { %v2090_v4 = vpop.eup %2089 }
 0x61a   :  { %v1553_v15 = vmul.f32 0.6931472, %v2090_v4 }
 0x61c   :  { %v1555_v16 = vsub.f32 %v1554_v14, %v1553_v15 }
 0x61e   :  { %v1556_v17 = vsel %vm1543_vm1, %v1555_v16, %v1536_v5 }
 0x61f   :  { %1557 = vst [vmem:[%s2216_s3] sm:$0xff] %v1556_v17 }
 0x620   :  { %1562 = vsyncpa [#allocation3], 1 }

</bundles_post_ra>
